<compile_context>
chip_gen: v7x
topology: tpu7x:2x2x1
jax: 0.10.0
libtpu: 0.0.40
codegen_flags: <defaults>
</compile_context>

<pallas_src>
import jax
import jax.numpy as jnp
from jax.experimental import pallas as pl
from jax.experimental.pallas import tpu as pltpu


def _default_vmem_limit():
    """64 MiB on v5e/v6e (128 MiB physical VMEM), 32 MiB otherwise (v7x has 64 MiB physical)."""
    try:
        cap = pltpu.get_tpu_info().vmem_capacity_bytes
        if cap >= 100 * 1024 * 1024:
            return 64 * 1024 * 1024
    except Exception:
        pass
    return 32 * 1024 * 1024


def _autoencoder_kernel(x_ref,
                        w1_ref, b1_ref,
                        w23_ref, b23_ref,
                        w4_ref, b4_ref,
                        o_ref):
    wdt = w1_ref.dtype
    x = x_ref[...].astype(wdt)

    # encoder: Linear -> ReLU   (f32 accumulation on the MXU, f32 bias + ReLU)
    h = jnp.dot(x, w1_ref[...], preferred_element_type=jnp.float32) + b1_ref[...]
    h = jnp.maximum(h, 0.0)

    # fused bottleneck pair: encoder Linear -> decoder Linear (no activation between) -> ReLU
    d = jnp.dot(h.astype(wdt), w23_ref[...], preferred_element_type=jnp.float32) + b23_ref[...]
    d = jnp.maximum(d, 0.0)

    # decoder output Linear
    y = jnp.dot(d.astype(wdt), w4_ref[...], preferred_element_type=jnp.float32) + b4_ref[...]

    o_ref[...] = y.astype(o_ref.dtype)


def _choose_tile_rows(n_rows, packed_width, io_itemsize, vmem_limit_bytes):
    """Pick a batch tile (in packed rows, multiple of 8) that fits VMEM and leaves a long grid."""
    lane_width = max(packed_width, 128)
    # 2 input + 2 output pipeline buffers (I/O dtype) + ~3 f32 lane-padded intermediates (h,d,y).
    per_row_bytes = 4 * lane_width * io_itemsize + 3 * lane_width * 4
    budget = (vmem_limit_bytes * 3) // 4          # headroom for resident weights + compiler scratch
    max_rows = max(8, budget // per_row_bytes)

    tile = min(max_rows, 2048, n_rows)
    if n_rows >= 8 * 512:
        # Long batches: >= 8 grid steps (>= 4 per v7x TensorCore) at >= 512-row tiles
        # (512+ rows already sit at ~85% of the HBM roofline, so more steps is free).
        tile = min(tile, max(512, -(-n_rows // 8)))
    elif n_rows >= 16:
        # Short batches: still give the software pipeline >= 2 steps.
        tile = min(tile, max(8, n_rows // 2))
    tile = max(8, (tile // 8) * 8)
    return tile


def autoencoder_forward(x, params, *, tile_rows=None, weight_dtype=None, vmem_limit_bytes=None):
    """x: (B, input_dim). params: dict of (in, out) weights and (1, out) biases (float32).

    weight_dtype: dtype used for x/weights inside the kernel (defaults to x.dtype).  Biases and
    accumulation stay f32; output dtype matches x.dtype.
    """
    B, D = x.shape
    out_dtype = x.dtype
    f32 = jnp.float32
    wdt = jnp.dtype(weight_dtype) if weight_dtype is not None else jnp.dtype(x.dtype)
    if vmem_limit_bytes is None:
        vmem_limit_bytes = _default_vmem_limit()

    # Fold the activation-free bottleneck pair (encoder[2] then decoder[0]) into one linear map.
    w23 = jnp.dot(params["w2"].astype(f32), params["w3"].astype(f32))
    b23 = jnp.dot(params["b2"].astype(f32), params["w3"].astype(f32)) + params["b3"].astype(f32)

    # Lane packing: pack k batch rows per 128-lane row, block-diagonal weights kron(I_k, W).
    k = 128 // D if (D < 128 and 128 % D == 0) else 1

    def pack_w(w):
        return w if k == 1 else jnp.kron(jnp.eye(k, dtype=w.dtype), w)

    def pack_b(b):
        return b if k == 1 else jnp.tile(b, (1, k))

    w1 = pack_w(params["w1"].astype(f32)).astype(wdt)
    w23 = pack_w(w23).astype(wdt)
    w4 = pack_w(params["w4"].astype(f32)).astype(wdt)
    b1 = pack_b(params["b1"].astype(f32))
    b23 = pack_b(b23)
    b4 = pack_b(params["b4"].astype(f32))

    packed_width = k * D
    n_rows = -(-B // k)                               # packed rows before tile padding
    if tile_rows is None:
        tile_rows = _choose_tile_rows(n_rows, packed_width,
                                      jnp.dtype(x.dtype).itemsize, vmem_limit_bytes)
    n_steps = -(-n_rows // tile_rows)
    rows_padded = n_steps * tile_rows
    pad = rows_padded * k - B
    if pad:
        x = jnp.concatenate([x, jnp.zeros((pad, D), x.dtype)], axis=0)
    xp = x.reshape(rows_padded, packed_width)

    def full_spec(arr):
        # Small weights/biases: one full block, constant index_map -> resident in VMEM.
        return pl.BlockSpec(arr.shape, lambda i: (0,) * arr.ndim)

    out = pl.pallas_call(
        _autoencoder_kernel,
        out_shape=jax.ShapeDtypeStruct((rows_padded, packed_width), out_dtype),
        grid_spec=pltpu.PrefetchScalarGridSpec(
            num_scalar_prefetch=0,
            grid=(n_steps,),
            in_specs=[
                pl.BlockSpec((tile_rows, packed_width), lambda i: (i, 0)),
                full_spec(w1), full_spec(b1),
                full_spec(w23), full_spec(b23),
                full_spec(w4), full_spec(b4),
            ],
            out_specs=pl.BlockSpec((tile_rows, packed_width), lambda i: (i, 0)),
        ),
        compiler_params=pltpu.CompilerParams(
            dimension_semantics=("parallel",),
            vmem_limit_bytes=vmem_limit_bytes,
        ),
    )(xp, w1, b1, w23, b23, w4, b4)

    return out.reshape(rows_padded * k, D)[:B]


def init_params(key, input_dim, hidden_dim=4, bottleneck_dim=2, dtype=jnp.float32):
    """Deterministic synthetic init. Weights stored as (in_features, out_features)."""
    ks = jax.random.split(key, 8)

    def lin(kw, kb, fan_in, fan_out):
        bound = 1.0 / jnp.sqrt(fan_in)
        w = jax.random.uniform(kw, (fan_in, fan_out), dtype, -bound, bound)
        b = jax.random.uniform(kb, (1, fan_out), dtype, -bound, bound)
        return w, b

    w1, b1 = lin(ks[0], ks[1], input_dim, hidden_dim)        # encoder[0]
    w2, b2 = lin(ks[2], ks[3], hidden_dim, bottleneck_dim)   # encoder[2]
    w3, b3 = lin(ks[4], ks[5], bottleneck_dim, hidden_dim)   # decoder[0]
    w4, b4 = lin(ks[6], ks[7], hidden_dim, input_dim)        # decoder[2]
    return dict(w1=w1, b1=b1, w2=w2, b2=b2, w3=w3, b3=b3, w4=w4, b4=b4)


def _reference_forward(x, p):
    # Unfused reference, matching the PyTorch module exactly.
    h = jnp.maximum(x @ p["w1"] + p["b1"], 0.0)
    z = h @ p["w2"] + p["b2"]
    d = jnp.maximum(z @ p["w3"] + p["b3"], 0.0)
    return d @ p["w4"] + p["b4"]


if __name__ == "__main__":
    key = jax.random.PRNGKey(0)
    k_param, k_x, k_x2 = jax.random.split(key, 3)

    batch, input_dim, hidden_dim, bottleneck_dim = 256, 32, 4, 2
    params = init_params(k_param, input_dim, hidden_dim, bottleneck_dim)
    x = jax.random.normal(k_x, (batch, input_dim), jnp.float32)

    y_ref = _reference_forward(x, params)

    # f32 path (lane-packed, k = 128 // 32 = 4): matches PyTorch up to w2@w3-fusion rounding.
    y = autoencoder_forward(x, params)
    y = jax.block_until_ready(y)
    assert y.shape == (batch, input_dim)
    assert jnp.allclose(y, y_ref, atol=2e-5, rtol=2e-5)

    # bf16 I/O path (halves HBM traffic; f32 accumulation) — looser tolerance by construction.
    y_bf16 = autoencoder_forward(x.astype(jnp.bfloat16), params, weight_dtype=jnp.bfloat16)
    y_bf16 = jax.block_until_ready(y_bf16)
    assert jnp.allclose(y_bf16.astype(jnp.float32), y_ref, atol=5e-2, rtol=5e-2)

    # Ragged batch path (B not a multiple of 8 or of the packing factor): padded + sliced.
    xr = jax.random.normal(k_x2, (37, input_dim), jnp.float32)
    yr = jax.block_until_ready(autoencoder_forward(xr, params))
    assert yr.shape == (37, input_dim)
    assert jnp.allclose(yr, _reference_forward(xr, params), atol=2e-5, rtol=2e-5)

    print("KERNEL_OK")
</pallas_src>

<mosaic_0001>
module attributes {stable_mosaic.version = 11 : i64} {
  func.func @_autoencoder_kernel(%arg0: i32, %arg1: memref<32x128xf32, #tpu.memory_space<vmem>>, %arg2: memref<128x16xf32, #tpu.memory_space<vmem>>, %arg3: memref<1x16xf32, #tpu.memory_space<vmem>>, %arg4: memref<16x16xf32, #tpu.memory_space<vmem>>, %arg5: memref<1x16xf32, #tpu.memory_space<vmem>>, %arg6: memref<16x128xf32, #tpu.memory_space<vmem>>, %arg7: memref<1x128xf32, #tpu.memory_space<vmem>>, %arg8: memref<32x128xf32, #tpu.memory_space<vmem>>) attributes {dimension_semantics = [#tpu.dimension_semantics<parallel>], iteration_bounds = array<i64: 2>, scalar_prefetch = 0 : i64, scratch_operands = 0 : i64, tpu.core_type = #tpu.core_type<tc>, window_params = [{transform_indices = @transform_0, window_bounds = array<i64: 32, 128>}, {pipeline_mode = #tpu.pipeline_mode<synchronous>, transform_indices = @transform_1, window_bounds = array<i64: 128, 16>}, {pipeline_mode = #tpu.pipeline_mode<synchronous>, transform_indices = @transform_2, window_bounds = array<i64: 1, 16>}, {pipeline_mode = #tpu.pipeline_mode<synchronous>, transform_indices = @transform_3, window_bounds = array<i64: 16, 16>}, {pipeline_mode = #tpu.pipeline_mode<synchronous>, transform_indices = @transform_4, window_bounds = array<i64: 1, 16>}, {pipeline_mode = #tpu.pipeline_mode<synchronous>, transform_indices = @transform_5, window_bounds = array<i64: 16, 128>}, {pipeline_mode = #tpu.pipeline_mode<synchronous>, transform_indices = @transform_6, window_bounds = array<i64: 1, 128>}, {transform_indices = @transform_7, window_bounds = array<i64: 32, 128>}]} {
    %c0 = arith.constant 0 : index
    %c0_0 = arith.constant 0 : index
    %0 = vector.load %arg1[%c0, %c0_0] : memref<32x128xf32, #tpu.memory_space<vmem>>, vector<32x128xf32>
    %c0_1 = arith.constant 0 : index
    %c0_2 = arith.constant 0 : index
    %1 = vector.load %arg2[%c0_1, %c0_2] : memref<128x16xf32, #tpu.memory_space<vmem>>, vector<128x16xf32>
    %cst = arith.constant dense<0.000000e+00> : vector<32x16xf32>
    %2 = tpu.matmul %0, %1, %cst {dimension_numbers = #tpu.dot_dimension_numbers<[1], [0], [0], [1], [0, 0, 1, 1], [], []>} : vector<32x128xf32>, vector<128x16xf32>, vector<32x16xf32> -> vector<32x16xf32>
    %c0_3 = arith.constant 0 : index
    %c0_4 = arith.constant 0 : index
    %3 = vector.load %arg3[%c0_3, %c0_4] : memref<1x16xf32, #tpu.memory_space<vmem>>, vector<1x16xf32>
    %4 = vector.broadcast %3 : vector<1x16xf32> to vector<32x16xf32>
    %5 = arith.addf %2, %4 : vector<32x16xf32>
    %cst_5 = arith.constant 0.000000e+00 : f32
    %6 = vector.broadcast %cst_5 : f32 to vector<32x16xf32>
    %7 = arith.maximumf %5, %6 : vector<32x16xf32>
    %c0_6 = arith.constant 0 : index
    %c0_7 = arith.constant 0 : index
    %8 = vector.load %arg4[%c0_6, %c0_7] : memref<16x16xf32, #tpu.memory_space<vmem>>, vector<16x16xf32>
    %cst_8 = arith.constant dense<0.000000e+00> : vector<32x16xf32>
    %9 = tpu.matmul %7, %8, %cst_8 {dimension_numbers = #tpu.dot_dimension_numbers<[1], [0], [0], [1], [0, 0, 1, 1], [], []>} : vector<32x16xf32>, vector<16x16xf32>, vector<32x16xf32> -> vector<32x16xf32>
    %c0_9 = arith.constant 0 : index
    %c0_10 = arith.constant 0 : index
    %10 = vector.load %arg5[%c0_9, %c0_10] : memref<1x16xf32, #tpu.memory_space<vmem>>, vector<1x16xf32>
    %11 = vector.broadcast %10 : vector<1x16xf32> to vector<32x16xf32>
    %12 = arith.addf %9, %11 : vector<32x16xf32>
    %cst_11 = arith.constant 0.000000e+00 : f32
    %13 = vector.broadcast %cst_11 : f32 to vector<32x16xf32>
    %14 = arith.maximumf %12, %13 : vector<32x16xf32>
    %c0_12 = arith.constant 0 : index
    %c0_13 = arith.constant 0 : index
    %15 = vector.load %arg6[%c0_12, %c0_13] : memref<16x128xf32, #tpu.memory_space<vmem>>, vector<16x128xf32>
    %cst_14 = arith.constant dense<0.000000e+00> : vector<32x128xf32>
    %16 = tpu.matmul %14, %15, %cst_14 {dimension_numbers = #tpu.dot_dimension_numbers<[1], [0], [0], [1], [0, 0, 1, 1], [], []>} : vector<32x16xf32>, vector<16x128xf32>, vector<32x128xf32> -> vector<32x128xf32>
    %c0_15 = arith.constant 0 : index
    %c0_16 = arith.constant 0 : index
    %17 = vector.load %arg7[%c0_15, %c0_16] : memref<1x128xf32, #tpu.memory_space<vmem>>, vector<1x128xf32>
    %18 = vector.broadcast %17 : vector<1x128xf32> to vector<32x128xf32>
    %19 = arith.addf %16, %18 : vector<32x128xf32>
    %c0_17 = arith.constant 0 : index
    %c0_18 = arith.constant 0 : index
    %20 = vector.load %arg8[%c0_17, %c0_18] : memref<32x128xf32, #tpu.memory_space<vmem>>, vector<32x128xf32>
    tpu.vector_store %arg8[%c0_17, %c0_18], %19 {strides = array<i32>} : memref<32x128xf32, #tpu.memory_space<vmem>>, vector<32x128xf32>,
    return
  }
  func.func @transform_0(%arg0: i32) -> (i32, i32) {
    %c0_i32 = arith.constant 0 : i32
    %c0_i32_0 = arith.constant 0 : i32
    return %arg0, %c0_i32 : i32, i32
  }
  func.func @transform_1(%arg0: i32) -> (i32, i32) {
    %c0_i32 = arith.constant 0 : i32
    %c0_i32_0 = arith.constant 0 : i32
    %c0_i32_1 = arith.constant 0 : i32
    return %c0_i32, %c0_i32_0 : i32, i32
  }
  func.func @transform_2(%arg0: i32) -> (i32, i32) {
    %c0_i32 = arith.constant 0 : i32
    %c0_i32_0 = arith.constant 0 : i32
    %c0_i32_1 = arith.constant 0 : i32
    return %c0_i32, %c0_i32_0 : i32, i32
  }
  func.func @transform_3(%arg0: i32) -> (i32, i32) {
    %c0_i32 = arith.constant 0 : i32
    %c0_i32_0 = arith.constant 0 : i32
    %c0_i32_1 = arith.constant 0 : i32
    return %c0_i32, %c0_i32_0 : i32, i32
  }
  func.func @transform_4(%arg0: i32) -> (i32, i32) {
    %c0_i32 = arith.constant 0 : i32
    %c0_i32_0 = arith.constant 0 : i32
    %c0_i32_1 = arith.constant 0 : i32
    return %c0_i32, %c0_i32_0 : i32, i32
  }
  func.func @transform_5(%arg0: i32) -> (i32, i32) {
    %c0_i32 = arith.constant 0 : i32
    %c0_i32_0 = arith.constant 0 : i32
    %c0_i32_1 = arith.constant 0 : i32
    return %c0_i32, %c0_i32_0 : i32, i32
  }
  func.func @transform_6(%arg0: i32) -> (i32, i32) {
    %c0_i32 = arith.constant 0 : i32
    %c0_i32_0 = arith.constant 0 : i32
    %c0_i32_1 = arith.constant 0 : i32
    return %c0_i32, %c0_i32_0 : i32, i32
  }
  func.func @transform_7(%arg0: i32) -> (i32, i32) {
    %c0_i32 = arith.constant 0 : i32
    %c0_i32_0 = arith.constant 0 : i32
    return %arg0, %c0_i32 : i32, i32
  }
}

</mosaic_0001>

<bundles_post_ra>
// kernel: tpu_custom_call.1
= control target key start
LH: loop header
LB: loop body
LE: loop exit
PB: predicated region body
PF: predicated region fallthrough
CT: control target
= control target key end

     0   :  { %12 = vsyncpa [#allocation3], 0  ;;  %s1180_s0 = inlined_call_operand.vmem [shape: f32[64,128], index: 0, kind: input, shape index: {}]   ;;  %s1181_s1 = inlined_call_operand.vmem [shape: f32[128,16], index: 1, kind: input, shape index: {}]   ;;  %s1182_s2 = inlined_call_operand.vmem [shape: f32[1,16], index: 2, kind: input, shape index: {}]   ;;  %s1183_s3 = inlined_call_operand.vmem [shape: f32[16,16], index: 3, kind: input, shape index: {}]   ;;  %s1184_s4 = inlined_call_operand.vmem [shape: f32[1,16], index: 4, kind: input, shape index: {}]   ;;  %s1185_s5 = inlined_call_operand.vmem [shape: f32[16,128], index: 5, kind: input, shape index: {}]   ;;  %s1186_s6 = inlined_call_operand.vmem [shape: f32[1,128], index: 6, kind: input, shape index: {}]   ;;  %s1187_s7 = inlined_call_operand.hbm [shape: f32[64,128], index: 7, kind: output, shape index: {}]  }
   0x1   :  { %14 = vsyncpa [#allocation3 + $0x1], 0  ;;  %s995_s24 = smov 0   ;;  %s997_s25 = smov 0  }
   0x2   :  { %s999_s26 = smov 0   ;;  %s1001_s27 = smov 0  }
   0x3 LB: > { %s1016_s28 = sadd.s32 4294967295, %s950_s27   ;;  %s693_s29 = sadd.s32 4294967294, %s950_s27   ;;  %s950_s27 = sphi %s1001_s27, %s1193_s27   ;;  %s946_s26 = sphi %s999_s26, %s1192_s26   ;;  %s942_s25 = sphi %s997_s25, %s1191_s25   ;;  %s938_s24 = sphi %s995_s24, %s1190_s24  }
   0x4   : > { %s1020_s30 = sadd.s32 1, %s950_s27   ;;  %s179_s8 = sadd.s32 1, %s946_s26 }
   0x5   : > { %s176_s9 = ssub.s32 %s950_s27, %s1020_s30  ;;  %p189_p0 = scmp.ne.s32.totalorder %s946_s26, %s942_s25 }
   0x6   : > { %p177_p1 = scmp.eq.s32.totalorder %s176_s9, 0  ;;  %p190_p2 = scmp.eq.s32.totalorder %s1016_s28, 1 }
   0x7   : > { %p195_p3 = scmp.ne.s32.totalorder %s942_s25, %s938_s24  ;;  %p196_p4 = scmp.eq.s32.totalorder %s693_s29, 1 }
   0x8   : > { %s1031_s10 = scalar_select %p177_p1, %s946_s26, %s179_s8  }
   0x9   : > { %p1033_p5 = por %p190_p2, %p189_p0  ;;  %p1037_p6 = por %p196_p4, %p195_p3 }
   0xa   : > { %p696_p7 = scmp.ge.s32.totalorder %s950_s27, 1  ;;  %p241_p8 = scmp.lt.s32.totalorder %s950_s27, 3 }
   0xc   : > { %p242_p9 = pnand %p696_p7, %p241_p8 }
   0xd   : > { %v284_v0 = vld [vmem:[%s1181_s1] sm:$0xff] (!%p242_p9)  ;;  %v285_v1 = vld [vmem:[%s1181_s1 + $0x8] sm:$0xff] (!%p242_p9)  ;;  %v286_v2 = vld [vmem:[%s1181_s1 + $0x10] sm:$0xff] (!%p242_p9)  ;;  %s698_s19 = sshll.u32 (!%p242_p9), %s1016_s28, 2  ;;  %vm405_vm0 = vcmask (!%p242_p9), 130048   ;;  %s270_s21 = sand.u32 (!%p242_p9), 1, %s942_s25  }
   0xe   : > { %245 = sbr.rel (%p242_p9) target bundleno = 718 (0x2ce), region = 48  ;;  %v807_v3 = vpack.c.bf16 (!%p242_p9), %v285_v1, %v284_v0  ;;  %v287_v4 = vld [vmem:[%s1181_s1 + $0x18] sm:$0xff] (!%p242_p9)  ;;  %p274_p10 = scmp.lt.s32.totalorder (!%p242_p9), %s698_s19, 7  ;;  %v288_v6 = vld [vmem:[%s1181_s1 + $0x20] sm:$0xff] (!%p242_p9)  ;;  %v289_v7 = vld [vmem:[%s1181_s1 + $0x28] sm:$0xff] (!%p242_p9) }
   0xf   : > { %v811_v5 = vpack.c.bf16 (!%p242_p9), %v287_v4, %v286_v2  ;;  %v815_v8 = vpack.c.bf16 (!%p242_p9), %v289_v7, %v288_v6  ;;  %v290_v9 = vld [vmem:[%s1181_s1 + $0x30] sm:$0xff] (!%p242_p9)  ;;  %v291_v10 = vld [vmem:[%s1181_s1 + $0x38] sm:$0xff] (!%p242_p9)  ;;  %v292_v13 = vld [vmem:[%s1181_s1 + $0x40] sm:$0xff] (!%p242_p9)  ;;  %s697_s22 = sshll.u32 (!%p242_p9), %s270_s21, 5  ;;  %s716_s13 = sshll.u32 (!%p242_p9), %s1016_s28, 9 }
  0x10   : > { %808 = vmatprep.subr.bf16.mxu0 (!%p242_p9), %v807_v3  ;;  %v819_v12 = vpack.c.bf16 (!%p242_p9), %v291_v10, %v290_v9  ;;  %v293_v14 = vld [vmem:[%s1181_s1 + $0x48] sm:$0xff] (!%p242_p9)  ;;  %v294_v16 = vld [vmem:[%s1181_s1 + $0x50] sm:$0xff] (!%p242_p9)  ;;  %v295_v17 = vld [vmem:[%s1181_s1 + $0x58] sm:$0xff] (!%p242_p9)  ;;  %s272_s8 = scalar_lea.vmem (!%p242_p9), [#allocation2], %s697_s22  ;;  %s1137_s16 = scalar_lea.hbm (!%p242_p9), %s1187_s7, %s716_s13 }
  0x11   : > { %810 = vmatpush3.bf16.msra.mxu0 (!%p242_p9), %v807_v3  ;;  %v823_v15 = vpack.c.bf16 (!%p242_p9), %v293_v14, %v292_v13  ;;  %v827_v18 = vpack.c.bf16 (!%p242_p9), %v295_v17, %v294_v16  ;;  %v296_v19 = vld [vmem:[%s1181_s1 + $0x60] sm:$0xff] (!%p242_p9)  ;;  %v297_v20 = vld [vmem:[%s1181_s1 + $0x68] sm:$0xff] (!%p242_p9)  ;;  %v298_v22 = vld [vmem:[%s1181_s1 + $0x70] sm:$0xff] (!%p242_p9)  ;;  %s952_s17 = smov (!%p242_p9), [#allocation2]  }
  0x12   : > { %812 = vmatprep.subr.bf16.mxu0 (!%p242_p9), %v811_v5  ;;  %v831_v21 = vpack.c.bf16 (!%p242_p9), %v297_v20, %v296_v19  ;;  %v299_v23 = vld [vmem:[%s1181_s1 + $0x78] sm:$0xff] (!%p242_p9)  ;;  %v396_v28 = vld [vmem:[%s1183_s3] sm:$0xff] (!%p242_p9)  ;;  %v397_v29 = vld [vmem:[%s1183_s3 + $0x8] sm:$0xff] (!%p242_p9)  ;;  %s892_s18 = sshll.u32 (!%p242_p9), %s952_s17, 4  ;;  %s893_s18 = int_to_ptr.vmem [resolvable:$false] %s892_s18 }
  0x13   : > { %v835_v24 = vpack.c.bf16 (!%p242_p9), %v299_v23, %v298_v22  ;;  %v839_v30 = vpack.c.bf16 (!%p242_p9), %v397_v29, %v396_v28  ;;  %v507_v31 = vld [vmem:[%s1185_s5] sm:$0xff] (!%p242_p9)  ;;  %v508_v32 = vld [vmem:[%s1185_s5 + $0x8] sm:$0xff] (!%p242_p9) }
  0x14   : > { %v843_v33 = vpack.c.bf16 (!%p242_p9), %v508_v32, %v507_v31  ;;  %v700_v34 = vld [vmem:[%s1182_s2] ss:$0 sm:$0xff] (!%p242_p9) }
  0x15   : > { %s1195_s19 = smov (!%p274_p10, %s698_s19), 7  ;;  %814 = vmatpush3.bf16.msra.mxu0 %v811_v5  ;;  %840 = vmatprep.subr.bf16.mxu1 %v839_v30  ;;  %v701_v47 = vld [vmem:[%s1184_s4] ss:$0 sm:$0xff] }
  0x16   : > { %s699_s9 = sshll.u32 %s1195_s19, 3  ;;  %816 = vmatprep.subr.bf16.mxu0 %v815_v8  ;;  %842 = vmatpush3.bf16.msra.mxu1 %v839_v30  ;;  %v706_v60 = vld [vmem:[%s1186_s6] ss:$0 sm:$0xff]  ;;  %s894_s19 = scalar_lea.vmem %s893_s18, 1024 }
  0x17   : > { %s1071_s20 = scalar_lea.vmem %s1180_s0, %s699_s9  ;;  %844 = vmatprep.subr.bf16.mxu1 %v843_v33  ;;  %s631_s9 = sshll.u32 %s272_s8, 4  ;;  %s1132_s9 = int_to_ptr.vmem [resolvable:$true] %s631_s9 }
  0x18   : > { %v280_v11 = vld [vmem:[%s1071_s20] sm:$0xff]  ;;  %v281_v25 = vld [vmem:[%s1071_s20 + $0x8] sm:$0xff]  ;;  %v282_v26 = vld [vmem:[%s1071_s20 + $0x10] sm:$0xff]  ;;  %s888_s28 = scalar_lea.vmem %s1132_s9, 512  ;;  %p895_p0 = scmp.lt.s32.totalorder %s1132_s9, %s893_s18 }
  0x19   : > { %781 = vmatprep.mubr.f32.mxu0 %v280_v11  ;;  %818 = vmatpush3.bf16.msra.mxu0 %v815_v8  ;;  %v283_v27 = vld [vmem:[%s1071_s20 + $0x18] sm:$0xff]  ;;  %s1139_s20 = scalar_lea.sflag [#allocation3], %s270_s21  ;;  %p889_p11 = scmp.ne.s32.totalorder %s1132_s9, %s888_s28 }
  0x1a   : > { %820 = vmatprep.subr.bf16.mxu0 %v819_v12  ;;  %p896_p1 = scmp.lt.s32.totalorder %s894_s19, %s888_s28 }
  0x1b   : > { %p890_p12 = pnand %p889_p11, %p1033_p5 }
  0x1c   : > { %p897_p2 = por %p896_p1, %p895_p0 }
  0x1d   : > { %822 = vmatpush3.bf16.msra.mxu0 %v819_v12  ;;  %p891_p13 = pneg %p890_p12 }
  0x1e   : > { %824 = vmatprep.subr.bf16.mxu0 %v823_v15 }
  0x1f   : > { %p898_p3 = pnand %p897_p2, %p891_p13 }
  0x21   : > { %826 = vmatpush3.bf16.msra.mxu0 %v823_v15 }
  0x22   : > { %828 = vmatprep.subr.bf16.mxu0 %v827_v18 }
  0x25   : > { %830 = vmatpush3.bf16.msra.mxu0 %v827_v18 }
  0x26   : > { %832 = vmatprep.subr.bf16.mxu0 %v831_v21 }
  0x29   : > { %834 = vmatpush3.bf16.msra.mxu0 %v831_v21 }
  0x2a   : > { %836 = vmatprep.subr.bf16.mxu0 %v835_v24 }
  0x2d   : > { %838 = vmatpush3.bf16.msra.mxu0 %v835_v24 }
  0x30   : > { %782 = vmatmul.mubr.f32.vlgmr.msra.gmra.mrb[0].mxu0 %v281_v25 }
  0x31   : > { %784 = vmatprep.mubr.f32.mxu0 %v282_v26 }
  0x34   : > { %785 = vmatmul.mubr.f32.gmra.mrb[2].mxu0 %v283_v27 }
 0x103   : > { %v783_v35 = vpop.f32.mrb[0].mxu0 }
 0x104   : > { %v379_v36 = vadd.f32 %v783_v35, %v700_v34  ;;  %v373_v37 = vpop.f32.mrb[1].mxu0 }
 0x105   : > { %v374_v38 = vadd.f32 %v700_v34, %v373_v37 }
 0x106   : > { %v393_v41 = vmax.f32 %v379_v36, 0.0 }
 0x107   : > { %v392_v39 = vmax.f32 %v374_v38, 0.0  ;;  %v786_v40 = vpop.f32.mrb[2].mxu0 }
 0x108   : > { %v389_v42 = vadd.f32 %v786_v40, %v700_v34  ;;  %v383_v43 = vpop.f32.mrb[3].mxu0 }
 0x109   : > { %v384_v44 = vadd.f32 %v700_v34, %v383_v43  ;;  %791 = vmatprep.mubr.msk.f32.mxu1 %vm405_vm0, %v392_v39 }
 0x10a   : > { %792 = vmatmul.mubr.msk.f32.vlgmr.msra.gmra.mrb[0].mxu1 %vm405_vm0, %v393_v41  ;;  %v395_v46 = vmax.f32 %v389_v42, 0.0 }
 0x10b   : > { %v394_v45 = vmax.f32 %v384_v44, 0.0  ;;  %846 = vmatpush3.bf16.msra.mxu1 %v843_v33 }
 0x10d   : > { %794 = vmatprep.mubr.msk.f32.mxu1 %vm405_vm0, %v394_v45 }
 0x10e   : > { %795 = vmatmul.mubr.msk.f32.gmra.mrb[2].mxu1 %vm405_vm0, %v395_v46 }
 0x1dd   : > { %v793_v48 = vpop.f32.mrb[0].mxu1 }
 0x1de   : > { %v490_v49 = vadd.f32 %v793_v48, %v701_v47  ;;  %v484_v50 = vpop.f32.mrb[1].mxu1 }
 0x1df   : > { %v485_v51 = vadd.f32 %v701_v47, %v484_v50 }
 0x1e0   : > { %v504_v54 = vmax.f32 %v490_v49, 0.0 }
 0x1e1   : > { %v503_v52 = vmax.f32 %v485_v51, 0.0  ;;  %v796_v53 = vpop.f32.mrb[2].mxu1 }
 0x1e2   : > { %v500_v55 = vadd.f32 %v796_v53, %v701_v47  ;;  %v494_v56 = vpop.f32.mrb[3].mxu1 }
 0x1e3   : > { %v495_v57 = vadd.f32 %v701_v47, %v494_v56  ;;  %801 = vmatprep.mubr.msk.f32.mxu1 %vm405_vm0, %v503_v52 }
 0x1e4   : > { %802 = vmatmul.mubr.msk.f32.vlgmr.msra.gmra.mrb[4].mxu1 %vm405_vm0, %v504_v54  ;;  %v506_v59 = vmax.f32 %v500_v55, 0.0 }
 0x1e5   : > { %v505_v58 = vmax.f32 %v495_v57, 0.0 }
 0x1e7   : > { %804 = vmatprep.mubr.msk.f32.mxu1 %vm405_vm0, %v505_v58 }
 0x1e8   : > { %805 = vmatmul.mubr.msk.f32.gmra.mrb[6].mxu1 %vm405_vm0, %v506_v59 }
 0x2b7   : > { %v803_v61 = vpop.f32.mrb[4].mxu1 }
 0x2b8   : > { %v600_v62 = vadd.f32 %v803_v61, %v706_v60  ;;  %v594_v63 = vpop.f32.mrb[5].mxu1 }
 0x2b9   : > { %v595_v0 = vadd.f32 %v706_v60, %v594_v63 }
 0x2ba   : > { %614 = vst [vmem:[%s272_s8 + $0x8] sm:$0xff] %v600_v62 }
 0x2bb   : > { %613 = vst [vmem:[%s272_s8] sm:$0xff] %v595_v0  ;;  %v806_v1 = vpop.f32.mrb[6].mxu1 }
 0x2bc   : > { %v610_v2 = vadd.f32 %v806_v1, %v706_v60  ;;  %v604_v3 = vpop.f32.mrb[7].mxu1 }
 0x2bd   : > { %v605_v4 = vadd.f32 %v706_v60, %v604_v3 }
 0x2be   : > { %616 = vst [vmem:[%s272_s8 + $0x18] sm:$0xff] %v610_v2 }
 0x2bf   : > { %615 = vst [vmem:[%s272_s8 + $0x10] sm:$0xff] %v605_v4 }
 0x2c0   : > { %901 = shalt.err (!%p898_p3)
}
 0x2c1   : > { %s902_s21 = scalar_lea.hbm %s1137_s16, 512  ;;  %s906_s29 = scalar_lea.hbm %s1187_s7, 1024 }
 0x2c2   : > { %p903_p4 = scmp.ne.s32.totalorder %s1137_s16, %s902_s21  ;;  %p907_p9 = scmp.lt.u32.totalorder %s1137_s16, %s1187_s7 }
 0x2c3   : > { %p908_p10 = scmp.lt.u32.totalorder %s906_s29, %s902_s21  ;;  %p910_p12 = scmp.lt.u32.totalorder %s902_s21, %s1137_s16 }
 0x2c4   : > { %p904_p7 = pnand %p903_p4, %p1033_p5 }
 0x2c5   : > { %p909_p11 = por %p908_p10, %p907_p9 }
 0x2c6   : > { %p905_p8 = pneg %p904_p7 }
 0x2c7   : > { %p911_p13 = por %p910_p12, %p909_p11 }
 0x2c9   : > { %p912_p0 = pnand %p911_p13, %p905_p8 }
 0x2cb   : > { %915 = shalt.err (!%p912_p0)
}
 0x2cc   : > { %s953_s14 = smov 128   ;;  %s954_s15 = smov 8  }
 0x2cd   : > { %847 = dma.vmem_to_hbm [thread:$0]  (%p1033_p5), %s1132_s9, 512, %s1137_s16, %s1139_s20, %s953_s14, %s953_s14, %s954_s15  }
 0x2ce PF: > { %p853_p1 = scmp.ge.s32.totalorder %s950_s27, 2  ;;  %s646_s28 = sand.u32 1, %s938_s24  }
 0x2cf   : > { %s647_s17 = scalar_lea.sflag [#allocation3], %s646_s28 }
 0x2d0   : > { %p850_p2 = pnand %p853_p1, %p1037_p6 }
 0x2d2   : > { %933 = dma.done.wait (!%p850_p2), %s647_s17, 512  }
 0x2d3   : > { %935 = vsyncadd (!%p850_p2), %s647_s17, 4294966784  ;;  %p17_p3 = scmp.ge.s32.totalorder %s1020_s30, 4   ;;  %s1190_s24 = smov %s942_s25 }
 0x2d4   : > { %s1191_s25 = smov %s946_s26  ;;  %s1192_s26 = smov %s1031_s10 }
 0x2d5   : > { %s1193_s27 = smov %s1020_s30  ;;  %19 = sbr.rel (!%p17_p3) target bundleno = 3 (0x3), region = 83 }
 0x2dc   :  { %652 = vsyncpa [#allocation3], 1 }
 0x2dd   :  { %654 = vsyncpa [#allocation3 + $0x1], 1 }

</bundles_post_ra>
